<compile_context>
chip_gen: v6e
topology: v6e:2x2x1
jax: 0.10.0
libtpu: 0.0.40
codegen_flags: <defaults>
</compile_context>

<pallas_src>
import functools

import jax
import jax.numpy as jnp
import numpy as np
from jax.experimental import pallas as pl
from jax.experimental.pallas import tpu as pltpu


def _temporal_block_kernel(x_ref, w1_ref, b1_ref, w2_ref, b2_ref, *rest,
                           K, dilation, P, L, B, has_downsample):
    """B batch items: fused conv1+relu+conv2+relu+residual(+1x1 conv)+relu.

    Layout: channels on sublanes, time on lanes (NCW).
    """
    if has_downsample:
        wd_ref, bd_ref, o_ref = rest
    else:
        (o_ref,) = rest

    cdt = x_ref.dtype  # compute dtype (f32 or bf16); accumulation is always f32

    def im2col(a):
        # a: (C, L) -> (K*C, L); row k*C + c at time t holds a[c, t - (P - k*d)]
        # with zeros where the (causal) index is negative.  All shifts static.
        C = a.shape[0]
        taps = []
        for k in range(K):
            s = P - k * dilation          # left zero-shift for tap k (>= 0)
            if s == 0:
                taps.append(a)
            elif s >= L:
                taps.append(jnp.zeros((C, L), cdt))
            else:
                taps.append(jnp.concatenate(
                    [jnp.zeros((C, s), cdt), a[:, : L - s]], axis=1))
        return jnp.concatenate(taps, axis=0)

    for b in range(B):                                    # static unroll
        x = x_ref[b]                                      # (Cin, L)

        # ---- conv1 (dilated, causal) as one matmul + bias + ReLU ----
        h = jnp.dot(w1_ref[...], im2col(x),
                    preferred_element_type=jnp.float32)   # (Cmid, L) f32
        h = jnp.maximum(h + b1_ref[...], 0.0)
        # TODO(synk): dropout1/dropout2 are identity (inference); training-mode
        # masking would use pltpu.prng_seed / pltpu.prng_random_bits.

        # ---- conv2 (dilated, causal) as one matmul + bias + ReLU ----
        out = jnp.dot(w2_ref[...], im2col(h.astype(cdt)),
                      preferred_element_type=jnp.float32)  # (Cout, L) f32
        out = jnp.maximum(out + b2_ref[...], 0.0)

        # ---- residual branch ----
        if has_downsample:
            res = jnp.dot(wd_ref[...], x,
                          preferred_element_type=jnp.float32) + bd_ref[...]
        else:
            res = x.astype(jnp.float32)                   # Cin == Cout

        o_ref[b] = jnp.maximum(out + res, 0.0).astype(o_ref.dtype)


def _pick_batch_block(N, max_block=8):
    """Largest divisor of N <= max_block that keeps >= 2 grid steps (v7x has
    2 TensorCores); falls back to N (single step) if impossible."""
    for b in range(min(max_block, N), 0, -1):
        if N % b == 0 and N // b >= 2:
            return b
    return N


def temporal_block_pallas(x_ncw, params, *, kernel_size, stride, dilation,
                          padding, compute_dtype=jnp.float32, batch_block=None):
    """Forward pass matching TemporalBlock.forward. x_ncw: (N, C_in, L)."""
    assert stride == 1, "TemporalBlock residual add requires stride=1"
    assert padding == (kernel_size - 1) * dilation, \
        "chomp(padding) only preserves length when padding == (K-1)*dilation"

    N, Cin, L = x_ncw.shape
    Cout = params["w1"].shape[0]
    K, P = kernel_size, padding
    has_downsample = params.get("wd") is not None
    if not has_downsample:
        assert Cin == Cout, "identity residual requires n_inputs == n_outputs"

    B = batch_block if batch_block is not None else _pick_batch_block(N)
    assert N % B == 0

    x = x_ncw.astype(compute_dtype)

    # (Cout, Cin, K) -> (Cout, K*Cin): column index k*Cin + ci matches the
    # im2col row ordering built inside the kernel.
    w1_2d = jnp.transpose(params["w1"], (0, 2, 1)).reshape(Cout, K * Cin)
    w2_2d = jnp.transpose(params["w2"], (0, 2, 1)).reshape(Cout, K * Cout)
    w1_2d = w1_2d.astype(compute_dtype)
    w2_2d = w2_2d.astype(compute_dtype)
    b1 = params["b1"].reshape(Cout, 1).astype(jnp.float32)
    b2 = params["b2"].reshape(Cout, 1).astype(jnp.float32)

    args = [x, w1_2d, b1, w2_2d, b2]
    in_specs = [
        pl.BlockSpec((B, Cin, L), lambda n: (n, 0, 0)),       # x (NCW)
        pl.BlockSpec((Cout, K * Cin), lambda n: (0, 0)),      # w1 (im2col)
        pl.BlockSpec((Cout, 1), lambda n: (0, 0)),            # b1
        pl.BlockSpec((Cout, K * Cout), lambda n: (0, 0)),     # w2 (im2col)
        pl.BlockSpec((Cout, 1), lambda n: (0, 0)),            # b2
    ]
    if has_downsample:
        wd = params["wd"][:, :, 0].astype(compute_dtype)      # (Cout, Cin)
        bd = params["bd"].reshape(Cout, 1).astype(jnp.float32)
        args += [wd, bd]
        in_specs += [pl.BlockSpec((Cout, Cin), lambda n: (0, 0)),
                     pl.BlockSpec((Cout, 1), lambda n: (0, 0))]

    kernel = functools.partial(_temporal_block_kernel, K=K, dilation=dilation,
                               P=P, L=L, B=B, has_downsample=has_downsample)

    return pl.pallas_call(
        kernel,
        out_shape=jax.ShapeDtypeStruct((N, Cout, L), jnp.float32),
        grid_spec=pltpu.PrefetchScalarGridSpec(
            num_scalar_prefetch=0,
            grid=(N // B,),
            in_specs=in_specs,
            out_specs=pl.BlockSpec((B, Cout, L), lambda n: (n, 0, 0)),
        ),
        compiler_params=pltpu.CompilerParams(
            dimension_semantics=("parallel",),
            vmem_limit_bytes=32 * 1024 * 1024),
    )(*args)


def init_params(key, n_inputs, n_outputs, kernel_size):
    """Deterministic synthetic params. weight_norm: w = g * v / ||v|| (per out-ch)."""
    ks = jax.random.split(key, 8)
    v1 = 0.01 * jax.random.normal(ks[0], (n_outputs, n_inputs, kernel_size), jnp.float32)
    g1 = 1.0 + 0.1 * jax.random.normal(ks[1], (n_outputs,), jnp.float32)
    b1 = 0.1 * jax.random.normal(ks[2], (n_outputs,), jnp.float32)
    v2 = 0.01 * jax.random.normal(ks[3], (n_outputs, n_outputs, kernel_size), jnp.float32)
    g2 = 1.0 + 0.1 * jax.random.normal(ks[4], (n_outputs,), jnp.float32)
    b2 = 0.1 * jax.random.normal(ks[5], (n_outputs,), jnp.float32)

    def weight_norm(v, g):
        nrm = jnp.sqrt(jnp.sum(v * v, axis=(1, 2), keepdims=True))
        return g[:, None, None] * v / nrm

    params = {"w1": weight_norm(v1, g1), "b1": b1,
              "w2": weight_norm(v2, g2), "b2": b2}
    if n_inputs != n_outputs:   # downsample = nn.Conv1d(n_inputs, n_outputs, 1)
        params["wd"] = 0.01 * jax.random.normal(ks[6], (n_outputs, n_inputs, 1), jnp.float32)
        params["bd"] = 0.1 * jax.random.normal(ks[7], (n_outputs,), jnp.float32)
    else:
        params["wd"] = None
        params["bd"] = None
    return params


def temporal_block_ref(x_ncw, params, *, kernel_size, stride, dilation, padding):
    """Pure-JAX reference mirroring the PyTorch forward (NCW layout)."""
    L = x_ncw.shape[2]

    def conv1d(x, w, b, dil, pad):
        out = jax.lax.conv_general_dilated(
            x, w, window_strides=(stride,), padding=[(pad, pad)],
            rhs_dilation=(dil,), dimension_numbers=("NCH", "OIH", "NCH"))
        return out + b[None, :, None]

    P = padding
    h = conv1d(x_ncw, params["w1"], params["b1"], dilation, P)
    h = jax.nn.relu(h[:, :, :L])                        # chomp1 + activation1
    h = conv1d(h, params["w2"], params["b2"], dilation, P)
    out = jax.nn.relu(h[:, :, :L])                      # chomp2 + activation2
    if params["wd"] is None:
        res = x_ncw
    else:
        res = conv1d(x_ncw, params["wd"], params["bd"], 1, 0)
    return jax.nn.relu(out + res)


if __name__ == "__main__":
    key = jax.random.PRNGKey(0)
    k_x, k_p, k_x2, k_p2 = jax.random.split(key, 4)

    # --- config 1: Cin != Cout (1x1 downsample residual), f32 + bf16 compute ---
    N, C_IN, C_OUT, L = 2, 4, 8, 16
    K, STRIDE, DILATION = 3, 1, 2
    PADDING = (K - 1) * DILATION            # causal padding (chomped back off)

    x = jax.random.normal(k_x, (N, C_IN, L), jnp.float32)   # PyTorch NCW input
    params = init_params(k_p, C_IN, C_OUT, K)
    ref = temporal_block_ref(x, params, kernel_size=K, stride=STRIDE,
                             dilation=DILATION, padding=PADDING)

    out = jax.block_until_ready(temporal_block_pallas(
        x, params, kernel_size=K, stride=STRIDE, dilation=DILATION,
        padding=PADDING))
    np.testing.assert_allclose(np.asarray(out), np.asarray(ref),
                               rtol=1e-5, atol=1e-5)
    assert out.shape == (N, C_OUT, L)

    out_bf16 = jax.block_until_ready(temporal_block_pallas(
        x, params, kernel_size=K, stride=STRIDE, dilation=DILATION,
        padding=PADDING, compute_dtype=jnp.bfloat16))
    np.testing.assert_allclose(np.asarray(out_bf16), np.asarray(ref),
                               rtol=5e-2, atol=5e-2)

    # --- config 2: Cin == Cout (identity residual), B > 1 items per grid step ---
    N2, C2, L2, K2, D2 = 8, 6, 32, 2, 1
    P2 = (K2 - 1) * D2
    x2 = jax.random.normal(k_x2, (N2, C2, L2), jnp.float32)
    params2 = init_params(k_p2, C2, C2, K2)
    out2 = jax.block_until_ready(temporal_block_pallas(
        x2, params2, kernel_size=K2, stride=1, dilation=D2, padding=P2))
    ref2 = temporal_block_ref(x2, params2, kernel_size=K2, stride=1,
                              dilation=D2, padding=P2)
    np.testing.assert_allclose(np.asarray(out2), np.asarray(ref2),
                               rtol=1e-5, atol=1e-5)
    assert out2.shape == (N2, C2, L2)

    print("KERNEL_OK")
</pallas_src>

<mosaic_0001>
module attributes {stable_mosaic.version = 11 : i64} {
  func.func @_temporal_block_kernel(%arg0: i32, %arg1: memref<1x4x16xf32, #tpu.memory_space<vmem>>, %arg2: memref<8x12xf32, #tpu.memory_space<vmem>>, %arg3: memref<8x1xf32, #tpu.memory_space<vmem>>, %arg4: memref<8x24xf32, #tpu.memory_space<vmem>>, %arg5: memref<8x1xf32, #tpu.memory_space<vmem>>, %arg6: memref<8x4xf32, #tpu.memory_space<vmem>>, %arg7: memref<8x1xf32, #tpu.memory_space<vmem>>, %arg8: memref<1x8x16xf32, #tpu.memory_space<vmem>>) attributes {dimension_semantics = [#tpu.dimension_semantics<parallel>], iteration_bounds = array<i64: 2>, scalar_prefetch = 0 : i64, scratch_operands = 0 : i64, tpu.core_type = #tpu.core_type<tc>, window_params = [{transform_indices = @transform_0, window_bounds = array<i64: 1, 4, 16>}, {pipeline_mode = #tpu.pipeline_mode<synchronous>, transform_indices = @transform_1, window_bounds = array<i64: 8, 12>}, {pipeline_mode = #tpu.pipeline_mode<synchronous>, transform_indices = @transform_2, window_bounds = array<i64: 8, 1>}, {pipeline_mode = #tpu.pipeline_mode<synchronous>, transform_indices = @transform_3, window_bounds = array<i64: 8, 24>}, {pipeline_mode = #tpu.pipeline_mode<synchronous>, transform_indices = @transform_4, window_bounds = array<i64: 8, 1>}, {pipeline_mode = #tpu.pipeline_mode<synchronous>, transform_indices = @transform_5, window_bounds = array<i64: 8, 4>}, {pipeline_mode = #tpu.pipeline_mode<synchronous>, transform_indices = @transform_6, window_bounds = array<i64: 8, 1>}, {transform_indices = @transform_7, window_bounds = array<i64: 1, 8, 16>}]} {
    %c0 = arith.constant 0 : index
    %c0_0 = arith.constant 0 : index
    %c0_1 = arith.constant 0 : index
    %0 = vector.load %arg1[%c0, %c0_0, %c0_1] : memref<1x4x16xf32, #tpu.memory_space<vmem>>, vector<1x4x16xf32>
    %1 = vector.shape_cast %0 : vector<1x4x16xf32> to vector<4x16xf32>
    %c0_2 = arith.constant 0 : index
    %c0_3 = arith.constant 0 : index
    %2 = vector.load %arg2[%c0_2, %c0_3] : memref<8x12xf32, #tpu.memory_space<vmem>>, vector<8x12xf32>
    %cst = arith.constant 0.000000e+00 : f32
    %3 = vector.broadcast %cst : f32 to vector<4x4xf32>
    %4 = vector.extract_strided_slice %1 {offsets = [0, 0], sizes = [4, 12], strides = [1, 1]} : vector<4x16xf32> to vector<4x12xf32>
    %5 = tpu.concatenate %3, %4 in 1 : vector<4x4xf32>, vector<4x12xf32> -> vector<4x16xf32>
    %cst_4 = arith.constant 0.000000e+00 : f32
    %6 = vector.broadcast %cst_4 : f32 to vector<4x2xf32>
    %7 = vector.extract_strided_slice %1 {offsets = [0, 0], sizes = [4, 14], strides = [1, 1]} : vector<4x16xf32> to vector<4x14xf32>
    %8 = tpu.concatenate %6, %7 in 1 : vector<4x2xf32>, vector<4x14xf32> -> vector<4x16xf32>
    %9 = tpu.concatenate %5, %8, %1 in 0 : vector<4x16xf32>, vector<4x16xf32>, vector<4x16xf32> -> vector<12x16xf32>
    %cst_5 = arith.constant dense<0.000000e+00> : vector<8x16xf32>
    %10 = tpu.matmul %2, %9, %cst_5 {dimension_numbers = #tpu.dot_dimension_numbers<[1], [0], [0], [1], [0, 0, 1, 1], [], []>} : vector<8x12xf32>, vector<12x16xf32>, vector<8x16xf32> -> vector<8x16xf32>
    %c0_6 = arith.constant 0 : index
    %c0_7 = arith.constant 0 : index
    %11 = vector.load %arg3[%c0_6, %c0_7] : memref<8x1xf32, #tpu.memory_space<vmem>>, vector<8x1xf32>
    %12 = vector.broadcast %11 : vector<8x1xf32> to vector<8x16xf32>
    %13 = arith.addf %10, %12 : vector<8x16xf32>
    %cst_8 = arith.constant 0.000000e+00 : f32
    %14 = vector.broadcast %cst_8 : f32 to vector<8x16xf32>
    %15 = arith.maximumf %13, %14 : vector<8x16xf32>
    %c0_9 = arith.constant 0 : index
    %c0_10 = arith.constant 0 : index
    %16 = vector.load %arg4[%c0_9, %c0_10] : memref<8x24xf32, #tpu.memory_space<vmem>>, vector<8x24xf32>
    %cst_11 = arith.constant 0.000000e+00 : f32
    %17 = vector.broadcast %cst_11 : f32 to vector<8x4xf32>
    %18 = vector.extract_strided_slice %15 {offsets = [0, 0], sizes = [8, 12], strides = [1, 1]} : vector<8x16xf32> to vector<8x12xf32>
    %19 = tpu.concatenate %17, %18 in 1 : vector<8x4xf32>, vector<8x12xf32> -> vector<8x16xf32>
    %cst_12 = arith.constant 0.000000e+00 : f32
    %20 = vector.broadcast %cst_12 : f32 to vector<8x2xf32>
    %21 = vector.extract_strided_slice %15 {offsets = [0, 0], sizes = [8, 14], strides = [1, 1]} : vector<8x16xf32> to vector<8x14xf32>
    %22 = tpu.concatenate %20, %21 in 1 : vector<8x2xf32>, vector<8x14xf32> -> vector<8x16xf32>
    %23 = tpu.concatenate %19, %22, %15 in 0 : vector<8x16xf32>, vector<8x16xf32>, vector<8x16xf32> -> vector<24x16xf32>
    %cst_13 = arith.constant dense<0.000000e+00> : vector<8x16xf32>
    %24 = tpu.matmul %16, %23, %cst_13 {dimension_numbers = #tpu.dot_dimension_numbers<[1], [0], [0], [1], [0, 0, 1, 1], [], []>} : vector<8x24xf32>, vector<24x16xf32>, vector<8x16xf32> -> vector<8x16xf32>
    %c0_14 = arith.constant 0 : index
    %c0_15 = arith.constant 0 : index
    %25 = vector.load %arg5[%c0_14, %c0_15] : memref<8x1xf32, #tpu.memory_space<vmem>>, vector<8x1xf32>
    %26 = vector.broadcast %25 : vector<8x1xf32> to vector<8x16xf32>
    %27 = arith.addf %24, %26 : vector<8x16xf32>
    %cst_16 = arith.constant 0.000000e+00 : f32
    %28 = vector.broadcast %cst_16 : f32 to vector<8x16xf32>
    %29 = arith.maximumf %27, %28 : vector<8x16xf32>
    %c0_17 = arith.constant 0 : index
    %c0_18 = arith.constant 0 : index
    %30 = vector.load %arg6[%c0_17, %c0_18] : memref<8x4xf32, #tpu.memory_space<vmem>>, vector<8x4xf32>
    %cst_19 = arith.constant dense<0.000000e+00> : vector<8x16xf32>
    %31 = tpu.matmul %30, %1, %cst_19 {dimension_numbers = #tpu.dot_dimension_numbers<[1], [0], [0], [1], [0, 0, 1, 1], [], []>} : vector<8x4xf32>, vector<4x16xf32>, vector<8x16xf32> -> vector<8x16xf32>
    %c0_20 = arith.constant 0 : index
    %c0_21 = arith.constant 0 : index
    %32 = vector.load %arg7[%c0_20, %c0_21] : memref<8x1xf32, #tpu.memory_space<vmem>>, vector<8x1xf32>
    %33 = vector.broadcast %32 : vector<8x1xf32> to vector<8x16xf32>
    %34 = arith.addf %31, %33 : vector<8x16xf32>
    %35 = arith.addf %29, %34 : vector<8x16xf32>
    %cst_22 = arith.constant 0.000000e+00 : f32
    %36 = vector.broadcast %cst_22 : f32 to vector<8x16xf32>
    %37 = arith.maximumf %35, %36 : vector<8x16xf32>
    %c0_23 = arith.constant 0 : index
    %c0_24 = arith.constant 0 : index
    %c0_25 = arith.constant 0 : index
    %38 = vector.load %arg8[%c0_23, %c0_24, %c0_25] : memref<1x8x16xf32, #tpu.memory_space<vmem>>, vector<1x8x16xf32>
    %39 = vector.shape_cast %38 : vector<1x8x16xf32> to vector<8x16xf32>
    %40 = vector.shape_cast %37 : vector<8x16xf32> to vector<1x8x16xf32>
    tpu.vector_store %arg8[%c0_23, %c0_24, %c0_25], %40 {strides = array<i32>} : memref<1x8x16xf32, #tpu.memory_space<vmem>>, vector<1x8x16xf32>,
    return
  }
  func.func @transform_0(%arg0: i32) -> (i32, i32, i32) {
    %c0_i32 = arith.constant 0 : i32
    %c0_i32_0 = arith.constant 0 : i32
    %c0_i32_1 = arith.constant 0 : i32
    return %arg0, %c0_i32, %c0_i32_0 : i32, i32, i32
  }
  func.func @transform_1(%arg0: i32) -> (i32, i32) {
    %c0_i32 = arith.constant 0 : i32
    %c0_i32_0 = arith.constant 0 : i32
    %c0_i32_1 = arith.constant 0 : i32
    return %c0_i32, %c0_i32_0 : i32, i32
  }
  func.func @transform_2(%arg0: i32) -> (i32, i32) {
    %c0_i32 = arith.constant 0 : i32
    %c0_i32_0 = arith.constant 0 : i32
    %c0_i32_1 = arith.constant 0 : i32
    return %c0_i32, %c0_i32_0 : i32, i32
  }
  func.func @transform_3(%arg0: i32) -> (i32, i32) {
    %c0_i32 = arith.constant 0 : i32
    %c0_i32_0 = arith.constant 0 : i32
    %c0_i32_1 = arith.constant 0 : i32
    return %c0_i32, %c0_i32_0 : i32, i32
  }
  func.func @transform_4(%arg0: i32) -> (i32, i32) {
    %c0_i32 = arith.constant 0 : i32
    %c0_i32_0 = arith.constant 0 : i32
    %c0_i32_1 = arith.constant 0 : i32
    return %c0_i32, %c0_i32_0 : i32, i32
  }
  func.func @transform_5(%arg0: i32) -> (i32, i32) {
    %c0_i32 = arith.constant 0 : i32
    %c0_i32_0 = arith.constant 0 : i32
    %c0_i32_1 = arith.constant 0 : i32
    return %c0_i32, %c0_i32_0 : i32, i32
  }
  func.func @transform_6(%arg0: i32) -> (i32, i32) {
    %c0_i32 = arith.constant 0 : i32
    %c0_i32_0 = arith.constant 0 : i32
    %c0_i32_1 = arith.constant 0 : i32
    return %c0_i32, %c0_i32_0 : i32, i32
  }
  func.func @transform_7(%arg0: i32) -> (i32, i32, i32) {
    %c0_i32 = arith.constant 0 : i32
    %c0_i32_0 = arith.constant 0 : i32
    %c0_i32_1 = arith.constant 0 : i32
    return %arg0, %c0_i32, %c0_i32_0 : i32, i32, i32
  }
}

</mosaic_0001>

<bundles_post_ra>
// kernel: tpu_custom_call.1
= control target key start
LH: loop header
LB: loop body
LE: loop exit
PB: predicated region body
PF: predicated region fallthrough
CT: control target
= control target key end

     0   :  { %12 = vsyncpa [#allocation3], 0  ;;  %s942_s0 = inlined_call_operand.vmem [shape: f32[2,4,16], index: 0, kind: input, shape index: {}]   ;;  %s943_s1 = inlined_call_operand.vmem [shape: f32[8,12], index: 1, kind: input, shape index: {}]   ;;  %s944_s2 = inlined_call_operand.vmem [shape: f32[8,1], index: 2, kind: input, shape index: {}]   ;;  %s945_s3 = inlined_call_operand.vmem [shape: f32[8,24], index: 3, kind: input, shape index: {}]   ;;  %s946_s4 = inlined_call_operand.vmem [shape: f32[8,1], index: 4, kind: input, shape index: {}]   ;;  %s947_s5 = inlined_call_operand.vmem [shape: f32[8,4], index: 5, kind: input, shape index: {}]   ;;  %s948_s6 = inlined_call_operand.vmem [shape: f32[8,1], index: 6, kind: input, shape index: {}]   ;;  %s949_s7 = inlined_call_operand.hbm [shape: f32[2,8,16], index: 7, kind: output, shape index: {}]  }
   0x1   :  { %14 = vsyncpa [#allocation3 + $0x1], 0  ;;  %s826_s24 = smov 0   ;;  %s828_s25 = smov 0  }
   0x2   :  { %s830_s26 = smov 0   ;;  %s832_s27 = smov 0  }
   0x3 LB: > { %s847_s28 = sadd.s32 4294967295, %s778_s27   ;;  %s623_s29 = sadd.s32 4294967294, %s778_s27   ;;  %s778_s27 = sphi %s832_s27, %s955_s27   ;;  %s774_s26 = sphi %s830_s26, %s954_s26   ;;  %s770_s25 = sphi %s828_s25, %s953_s25   ;;  %s766_s24 = sphi %s826_s24, %s952_s24  }
   0x4   : > { %s851_s30 = sadd.s32 1, %s778_s27   ;;  %s179_s8 = sadd.s32 1, %s774_s26 }
   0x5   : > { %s176_s9 = ssub.s32 %s778_s27, %s851_s30  ;;  %p189_p0 = scmp.ne.s32.totalorder %s774_s26, %s770_s25 }
   0x6   : > { %p177_p1 = scmp.eq.s32.totalorder %s176_s9, 0  ;;  %p190_p2 = scmp.eq.s32.totalorder %s847_s28, 1 }
   0x7   : > { %p195_p3 = scmp.ne.s32.totalorder %s770_s25, %s766_s24  ;;  %p196_p4 = scmp.eq.s32.totalorder %s623_s29, 1 }
   0x8   : > { %s862_s10 = scalar_select %p177_p1, %s774_s26, %s179_s8  }
   0x9   : > { %p864_p5 = por %p190_p2, %p189_p0  ;;  %p868_p6 = por %p196_p4, %p195_p3 }
   0xa   : > { %p626_p7 = scmp.ge.s32.totalorder %s778_s27, 1  ;;  %p239_p8 = scmp.lt.s32.totalorder %s778_s27, 3 }
   0xc   : > { %p240_p9 = pnand %p626_p7, %p239_p8 }
   0xd   : > { %p270_p10 = scmp.lt.s32.totalorder (!%p240_p9), %s847_s28, 1  ;;  %s783_s20 = smov (!%p240_p9), 2  }
   0xe   : > { %243 = sbr.rel (%p240_p9) target bundleno = 675 (0x2a3), region = 48  ;;  %s784_s21 = smov (!%p240_p9), 4  }
   0xf   : > { %s267_s18 = sand.u32 (!%p240_p9), 1, %s770_s25   ;;  %s785_s14 = smov (!%p240_p9), [#allocation2]  }
  0x10   : > { %s551_s9 = scalar_lea.sflag (!%p240_p9), [#allocation3], %s267_s18 }
  0x13   : > { %v780_v0 = vmov 0.0   ;;  %v292_v1 = vld [vmem:[%s944_s2] sm:$0xff]  ;;  %s271_s15 = scalar_select %p270_p10, %s847_s28, 1  ;;  %vm781_vm0 = vmmov 0   ;;  %v782_v2 = vmov 0   ;;  %vm290_vm1 = vcmask 1043456  }
  0x14   : > { %651 = vmatprep.subr.mxu0 %v780_v0  ;;  %658 = vmatprep.subr.mxu1 %v780_v0  ;;  %vm285_vm2 = vcmask 15360   ;;  %vm280_vm3 = vcmask 31744   ;;  %v275_v9 = vld [vmem:[%s943_s1] sm:$0xff]  ;;  %vm298_vm4 = vcmask 97280   ;;  %vm391_vm7 = vcmask 195584  }
  0x15   : > { %655 = vmatprep.mubr.msk.f32.mxu0 %vm781_vm0, %v780_v0  ;;  %716 = vset.pattern.permute.xlu1 %v782_v2  ;;  %s628_s16 = sshll.u32 %s271_s15, 2  ;;  %v466_v11 = vld [vmem:[%s947_s5] sm:$0xff]  ;;  %vm631_vm5 = vmneg %vm285_vm2  ;;  %vm548_vm8 = vcmask 130048   ;;  %s722_s15 = sshll.u32 %s785_s14, 4  ;;  %s723_s15 = int_to_ptr.vmem [resolvable:$false] %s722_s15 }
  0x16   : > { %295 = vperm.xlu1 %716, %v292_v1   ;;  %664 = vmatprep.mubr.msk.f32.mxu1 %vm781_vm0, %v780_v0  ;;  %s273_s19 = scalar_lea.vmem %s942_s0, %s628_s16  ;;  %v385_v17 = vld [vmem:[%s946_s4] sm:$0xff]  ;;  %vm633_vm6 = vmneg %vm280_vm3 }
  0x17   : > { %717 = vset.pattern.permute.xlu0 %v782_v2  ;;  %v274_v3 = vld [vmem:[%s273_s19] sm:$0xf]  ;;  %s627_s19 = sshll.u32 %s267_s18, 3 }
  0x18   : > { %282 = vrot.lane.b32.xlu0 %v274_v3, %s783_s20  ;;  %652 = vmatpush3.msk.msra.mxu0 %vm290_vm1, %v274_v3  ;;  %v467_v18 = vld [vmem:[%s948_s6] sm:$0xff] }
  0x19   : > { %653 = vmatprep.subr.mxu0 %v780_v0  ;;  %v375_v20 = vld [vmem:[%s945_s3] sm:$0xff] }
  0x1c   : > { %277 = vrot.lane.b32.xlu0 %v274_v3, %s784_s21 }
  0x8a   : > { %v283_v4 = vpop.permute.xlu0 %282 }
  0x8b   : > { %v286_v5 = vsel %vm285_vm2, 0.0, %v283_v4 }
  0x8c   : > { %v288_v6 = vrot.slane %v286_v5, 4 }
  0x8e   : > { %v278_v7 = vpop.permute.xlu0 %277 }
  0x8f   : > { %v281_v8 = vsel %vm280_vm3, 0.0, %v278_v7 }
  0x90   : > { %v291_v10 = vsel %vm290_vm1, %v281_v8, %v288_v6 }
  0x91   : > { %654 = vmatpush3.msra.mxu0 %v291_v10  ;;  %v296_v12 = vpop.permute.xlu1 %295 }
  0x92   : > { %656 = vmatmul.mubr.msk.f32.vlgmr.msra.gmra.mxu0 %vm298_vm4, %v275_v9  ;;  %667 = vmatprep.subr.mxu0 %v780_v0 }
  0x93   : > { %668 = vmatpush3.msk.msra.mxu0 %vm290_vm1, %v274_v3  ;;  %669 = vmatprep.mubr.msk.f32.mxu0 %vm781_vm0, %v780_v0 }
  0x96   : > { %670 = vmatmul.mubr.msk.f32.vlgmr.msra.gmra.mxu0 %vm280_vm3, %v466_v11 }
 0x152   : > { %v370_v13 = vpop.f32.mrf.mxu0 }
 0x153   : > { %v371_v14 = vadd.f32 %v370_v13, %v296_v12 }
 0x154   : > { %v657_v15 = vpop.f32.mrf.mxu0 }
 0x155   : > { %v374_v16 = vmax.f32 %v371_v14, 0.0 }
 0x156   : > { %v542_v22 = vpop.f32.mrf.mxu0 }
 0x157   : > { %377 = vrot.lane.b32.xlu0 %v374_v16, %s784_s21  ;;  %381 = vrot.lane.b32.xlu1 %v374_v16, %s783_s20  ;;  %s639_s20 = sshll.u32 %s847_s28, 7  ;;  %s269_s21 = scalar_lea.vmem [#allocation2], %s627_s19 }
 0x158   : > { %659 = vmatpush3.msra.mxu1 %v374_v16  ;;  %v671_v23 = vpop.f32.mrf.mxu0  ;;  %s564_s22 = sshll.u32 %s269_s21, 4  ;;  %s562_s8 = scalar_lea.hbm %s949_s7, %s639_s20  ;;  %s565_s22 = int_to_ptr.vmem [resolvable:$true] %s564_s22 }
 0x159   : > { %660 = vmatprep.subr.mxu1 %v780_v0  ;;  %s718_s13 = scalar_lea.vmem %s565_s22, 128  ;;  %s724_s28 = scalar_lea.vmem %s723_s15, 256 }
 0x15a   : > { %p719_p11 = scmp.ne.s32.totalorder %s565_s22, %s718_s13  ;;  %p725_p0 = scmp.lt.s32.totalorder %s565_s22, %s723_s15 }
 0x15b   : > { %388 = vperm.xlu1 %716, %v385_v17   ;;  %470 = vperm.xlu0 %717, %v467_v18   ;;  %p726_p1 = scmp.lt.s32.totalorder %s724_s28, %s718_s13 }
 0x15c   : > { %p720_p12 = pnand %p719_p11, %p864_p5 }
 0x15d   : > { %p727_p2 = por %p726_p1, %p725_p0 }
 0x15e   : > { %p721_p13 = pneg %p720_p12 }
 0x160   : > { %p728_p3 = pnand %p727_p2, %p721_p13 }
 0x1c9   : > { %v382_v19 = vpop.permute.xlu1 %381  ;;  %v378_v21 = vpop.permute.xlu0 %377 }
 0x1ca   : > { %661 = vmatpush3.msk.msra.mxu1 %vm631_vm5, %v382_v19 }
 0x1cb   : > { %662 = vmatprep.subr.mxu1 %v780_v0 }
 0x1cc   : > { %663 = vmatpush3.msk.msra.mxu1 %vm633_vm6, %v378_v21 }
 0x1cd   : > { %665 = vmatmul.mubr.msk.f32.vlgmr.msra.gmra.mxu1 %vm391_vm7, %v375_v20 }
 0x1d6   : > { %v471_v24 = vpop.permute.xlu0 %470  ;;  %v389_v25 = vpop.permute.xlu1 %388 }
 0x1d7   : > { %v543_v28 = vadd.f32 %v542_v22, %v471_v24 }
 0x28d   : > { %v461_v26 = vpop.f32.mrf.mxu1 }
 0x28e   : > { %v462_v27 = vadd.f32 %v461_v26, %v389_v25 }
 0x28f   : > { %v666_v29 = vpop.f32.mrf.mxu1 }
 0x290   : > { %v465_v30 = vmax.f32 %v462_v27, 0.0 }
 0x292   : > { %v546_v31 = vadd.f32 %v543_v28, %v465_v30 }
 0x294   : > { %v547_v32 = vmax.f32 %v546_v31, 0.0 }
 0x296   : > { %549 = vst.msk [vmem:[%s269_s21] sm:$0xff] %vm548_vm8, %v547_v32 }
 0x297   : > { %731 = shalt.err (!%p728_p3)
}
 0x298   : > { %s732_s16 = scalar_lea.hbm %s562_s8, 128  ;;  %s736_s19 = scalar_lea.hbm %s949_s7, 256 }
 0x299   : > { %p733_p4 = scmp.ne.s32.totalorder %s562_s8, %s732_s16  ;;  %p737_p9 = scmp.lt.s32.totalorder %s562_s8, %s949_s7 }
 0x29a   : > { %p738_p10 = scmp.lt.s32.totalorder %s736_s19, %s732_s16 }
 0x29b   : > { %p734_p7 = pnand %p733_p4, %p864_p5 }
 0x29c   : > { %p739_p11 = por %p738_p10, %p737_p9 }
 0x29d   : > { %p735_p8 = pneg %p734_p7 }
 0x29f   : > { %p740_p12 = pnand %p739_p11, %p735_p8 }
 0x2a1   : > { %743 = shalt.err (!%p740_p12)
}
 0x2a2   : > { %672 = dma.vmem_to_hbm [thread:$0]  (%p864_p5), %s565_s22, 128, %s562_s8, %s551_s9  }
 0x2a3 PF: > { %p678_p13 = scmp.ge.s32.totalorder %s778_s27, 2  ;;  %s576_s23 = sand.u32 1, %s766_s24  }
 0x2a4   : > { %s577_s29 = scalar_lea.sflag [#allocation3], %s576_s23 }
 0x2a5   : > { %p675_p0 = pnand %p678_p13, %p868_p6 }
 0x2a7   : > { %p676_p1 = pneg %p675_p0 }
 0x2a9   : > { %761 = dma.done.wait (%p676_p1), %s577_s29, 128  }
 0x2aa   : > { %763 = vsyncadd (%p676_p1), %s577_s29, 4294967168  ;;  %p17_p2 = scmp.ge.s32.totalorder %s851_s30, 4   ;;  %s952_s24 = smov %s770_s25 }
 0x2ab   : > { %s953_s25 = smov %s774_s26  ;;  %s954_s26 = smov %s862_s10 }
 0x2ac   : > { %s955_s27 = smov %s851_s30  ;;  %19 = sbr.rel (!%p17_p2) target bundleno = 3 (0x3), region = 83 }
 0x2b1   :  { %582 = vsyncpa [#allocation3], 1 }
 0x2b2   :  { %584 = vsyncpa [#allocation3 + $0x1], 1 }

</bundles_post_ra>
